<compile_context>
chip_gen: v5e
topology: v5e:2x2
jax: 0.10.0
libtpu: 0.0.40
codegen_flags: <defaults>
</compile_context>

<pallas_src>
import functools

import jax
import jax.numpy as jnp
from jax.experimental import pallas as pl
from jax.experimental.pallas import tpu as pltpu

EPS = 1e-05


def layernorm_kernel(x_ref, g_ref, b_ref, o_ref, *, inv_n):
    # x_ref: (TR, N)   g_ref/b_ref: (1, N) f32   o_ref: (TR, N)
    # Hoist the (grid-invariant) scale/shift loads out of the row math.
    g = g_ref[...]                       # (1, N) f32
    b = b_ref[...]                       # (1, N) f32

    x = x_ref[...].astype(jnp.float32)   # (TR, N)
    # Two-pass (numerically stable) mean/var, but with a single static 1/N
    # multiply instead of two jnp.mean divides.
    u = jnp.sum(x, axis=-1, keepdims=True) * inv_n
    xc = x - u
    s = jnp.sum(xc * xc, axis=-1, keepdims=True) * inv_n    # biased variance
    y = xc * jax.lax.rsqrt(s + EPS)
    o_ref[...] = (y * g + b).astype(o_ref.dtype)


def _round_up(x, m):
    return (x + m - 1) // m * m


def layernorm(x, g, b, *, row_tile=512, vmem_budget_bytes=24 * 1024 * 1024):
    """LayerNorm over the last axis.

    x: (rows, n_state); g, b: (n_state,).
    row_tile is a tuning knob; it is clamped so that the double-buffered
    (input + output) tiles stay within `vmem_budget_bytes` (safe for v7x's
    64 MiB VMEM as well as v5e/v6e's 128 MiB).
    """
    rows, n_state = x.shape
    itemsize = jnp.dtype(x.dtype).itemsize

    # Sublane packing for the dtype: 8 rows for f32, 16 for bf16, 32 for int8/fp8.
    sublane = max(8, 32 // itemsize)

    # Clamp row_tile by the VMEM budget: ~2 double-buffered arrays (in + out).
    bytes_per_row = n_state * itemsize
    max_rows_by_vmem = max(sublane, vmem_budget_bytes // (4 * bytes_per_row))
    rt = min(row_tile, max_rows_by_vmem)
    rt = min(rt, _round_up(rows, sublane))   # no need to tile past the input
    rt = _round_up(rt, sublane)

    # Pad rows up to a multiple of the tile (padded rows are sliced off below;
    # zero rows are numerically harmless for LayerNorm).
    rows_padded = _round_up(rows, rt)
    x_p = x if rows_padded == rows else jnp.pad(x, ((0, rows_padded - rows), (0, 0)))

    # Pre-cast scale/shift to f32 on the host (kernel never re-casts them).
    g2 = g.reshape(1, n_state).astype(jnp.float32)
    b2 = b.reshape(1, n_state).astype(jnp.float32)

    grid = (rows_padded // rt,)

    out = pl.pallas_call(
        functools.partial(layernorm_kernel, inv_n=1.0 / n_state),
        out_shape=jax.ShapeDtypeStruct((rows_padded, n_state), x.dtype),
        grid_spec=pltpu.PrefetchScalarGridSpec(
            num_scalar_prefetch=0,
            grid=grid,
            in_specs=[
                pl.BlockSpec((rt, n_state), lambda i: (i, 0)),
                pl.BlockSpec((1, n_state), lambda i: (0, 0)),
                pl.BlockSpec((1, n_state), lambda i: (0, 0)),
            ],
            out_specs=pl.BlockSpec((rt, n_state), lambda i: (i, 0)),
        ),
        compiler_params=pltpu.CompilerParams(
            dimension_semantics=("parallel",),       # shards rows across v7x's 2 TCs
            vmem_limit_bytes=48 * 1024 * 1024,       # past 16/32 MiB scoped defaults
        ),
    )(x_p, g2, b2)

    return out if rows_padded == rows else out[:rows]


def layernorm_nd(x, g, b, **kw):
    """Apply LayerNorm over the last axis of an arbitrarily-shaped input."""
    n_state = x.shape[-1]
    y = layernorm(x.reshape(-1, n_state), g, b, **kw)
    return y.reshape(x.shape)


def layernorm_ref(x, g, b, eps=EPS):
    x32 = x.astype(jnp.float32)
    u = jnp.mean(x32, axis=-1, keepdims=True)
    s = jnp.mean((x32 - u) ** 2, axis=-1, keepdims=True)
    return (x32 - u) / jnp.sqrt(s + eps) * g.astype(jnp.float32) + b.astype(jnp.float32)


# TODO(synk): the rest of Model.forward (token/position embeddings, attention
# blocks, MLP, tied-embedding logits and cross-entropy) is not implemented here;
# this kernel covers the custom LayerNorm module used throughout the model.

if __name__ == "__main__":
    key = jax.random.PRNGKey(0)

    # Shapes consistent with the module: n_embd = 768 (lane-dense, 6 * 128).
    batch, seq, n_state = 2, 8, 768
    x = jax.random.normal(key, (batch, seq, n_state), dtype=jnp.float32)

    # Deterministic parameter init matching nn.Parameter(torch.ones/zeros(n_state)).
    g = jnp.ones((n_state,), dtype=jnp.float32)
    b = jnp.zeros((n_state,), dtype=jnp.float32)

    out = layernorm_nd(x, g, b)
    jax.block_until_ready(out)
    ref = layernorm_ref(x, g, b)
    assert jnp.allclose(out, ref, atol=1e-5, rtol=1e-5), "f32 mismatch vs reference"

    # Exercise the padded-tail path (rows not a multiple of the tile) in bf16.
    key2 = jax.random.PRNGKey(1)
    x2 = jax.random.normal(key2, (3, 37, n_state), dtype=jnp.bfloat16)
    out2 = layernorm_nd(x2, g, b, row_tile=512)
    jax.block_until_ready(out2)
    ref2 = layernorm_ref(x2, g, b)
    assert jnp.allclose(out2.astype(jnp.float32), ref2, atol=2e-2, rtol=2e-2), \
        "bf16 mismatch vs reference"

    print("KERNEL_OK")
</pallas_src>

<mosaic_0001>
module attributes {stable_mosaic.version = 11 : i64} {
  func.func @layernorm_kernel(%arg0: i32, %arg1: memref<16x768xf32, #tpu.memory_space<vmem>>, %arg2: memref<1x768xf32, #tpu.memory_space<vmem>>, %arg3: memref<1x768xf32, #tpu.memory_space<vmem>>, %arg4: memref<16x768xf32, #tpu.memory_space<vmem>>) attributes {dimension_semantics = [#tpu.dimension_semantics<parallel>], iteration_bounds = array<i64: 1>, scalar_prefetch = 0 : i64, scratch_operands = 0 : i64, tpu.core_type = #tpu.core_type<tc>, window_params = [{transform_indices = @transform_0, window_bounds = array<i64: 16, 768>}, {pipeline_mode = #tpu.pipeline_mode<synchronous>, transform_indices = @transform_1, window_bounds = array<i64: 1, 768>}, {pipeline_mode = #tpu.pipeline_mode<synchronous>, transform_indices = @transform_2, window_bounds = array<i64: 1, 768>}, {transform_indices = @transform_3, window_bounds = array<i64: 16, 768>}]} {
    %c0 = arith.constant 0 : index
    %c0_0 = arith.constant 0 : index
    %0 = vector.load %arg2[%c0, %c0_0] : memref<1x768xf32, #tpu.memory_space<vmem>>, vector<1x768xf32>
    %c0_1 = arith.constant 0 : index
    %c0_2 = arith.constant 0 : index
    %1 = vector.load %arg3[%c0_1, %c0_2] : memref<1x768xf32, #tpu.memory_space<vmem>>, vector<1x768xf32>
    %c0_3 = arith.constant 0 : index
    %c0_4 = arith.constant 0 : index
    %2 = vector.load %arg1[%c0_3, %c0_4] : memref<16x768xf32, #tpu.memory_space<vmem>>, vector<16x768xf32>
    %cst = arith.constant dense<0.000000e+00> : vector<16xf32>
    %3 = vector.multi_reduction <add>, %2, %cst [1] : vector<16x768xf32> to vector<16xf32>
    %4 = vector.shape_cast %3 : vector<16xf32> to vector<16x1xf32>
    %cst_5 = arith.constant 0.00130208337 : f32
    %5 = vector.broadcast %cst_5 : f32 to vector<16x1xf32>
    %6 = arith.mulf %4, %5 : vector<16x1xf32>
    %7 = vector.broadcast %6 : vector<16x1xf32> to vector<16x768xf32>
    %8 = arith.subf %2, %7 : vector<16x768xf32>
    %9 = arith.mulf %8, %8 : vector<16x768xf32>
    %cst_6 = arith.constant dense<0.000000e+00> : vector<16xf32>
    %10 = vector.multi_reduction <add>, %9, %cst_6 [1] : vector<16x768xf32> to vector<16xf32>
    %11 = vector.shape_cast %10 : vector<16xf32> to vector<16x1xf32>
    %cst_7 = arith.constant 0.00130208337 : f32
    %12 = vector.broadcast %cst_7 : f32 to vector<16x1xf32>
    %13 = arith.mulf %11, %12 : vector<16x1xf32>
    %cst_8 = arith.constant 9.99999974E-6 : f32
    %14 = vector.broadcast %cst_8 : f32 to vector<16x1xf32>
    %15 = arith.addf %13, %14 : vector<16x1xf32>
    %16 = math.rsqrt %15 : vector<16x1xf32>
    %17 = vector.broadcast %16 : vector<16x1xf32> to vector<16x768xf32>
    %18 = arith.mulf %8, %17 : vector<16x768xf32>
    %19 = vector.broadcast %0 : vector<1x768xf32> to vector<16x768xf32>
    %20 = arith.mulf %18, %19 : vector<16x768xf32>
    %21 = vector.broadcast %1 : vector<1x768xf32> to vector<16x768xf32>
    %22 = arith.addf %20, %21 : vector<16x768xf32>
    %c0_9 = arith.constant 0 : index
    %c0_10 = arith.constant 0 : index
    %23 = vector.load %arg4[%c0_9, %c0_10] : memref<16x768xf32, #tpu.memory_space<vmem>>, vector<16x768xf32>
    tpu.vector_store %arg4[%c0_9, %c0_10], %22 {strides = array<i32>} : memref<16x768xf32, #tpu.memory_space<vmem>>, vector<16x768xf32>,
    return
  }
  func.func @transform_0(%arg0: i32) -> (i32, i32) {
    %c0_i32 = arith.constant 0 : i32
    %c0_i32_0 = arith.constant 0 : i32
    return %arg0, %c0_i32 : i32, i32
  }
  func.func @transform_1(%arg0: i32) -> (i32, i32) {
    %c0_i32 = arith.constant 0 : i32
    %c0_i32_0 = arith.constant 0 : i32
    %c0_i32_1 = arith.constant 0 : i32
    return %c0_i32, %c0_i32_0 : i32, i32
  }
  func.func @transform_2(%arg0: i32) -> (i32, i32) {
    %c0_i32 = arith.constant 0 : i32
    %c0_i32_0 = arith.constant 0 : i32
    %c0_i32_1 = arith.constant 0 : i32
    return %c0_i32, %c0_i32_0 : i32, i32
  }
  func.func @transform_3(%arg0: i32) -> (i32, i32) {
    %c0_i32 = arith.constant 0 : i32
    %c0_i32_0 = arith.constant 0 : i32
    return %arg0, %c0_i32 : i32, i32
  }
}

</mosaic_0001>

<bundles_post_ra>
// kernel: tpu_custom_call.1
= control target key start
LH: loop header
LB: loop body
LE: loop exit
PB: predicated region body
PF: predicated region fallthrough
CT: control target
= control target key end

     0   :  { %8 = vsyncpa [#allocation3], 0  ;;  %s476_s0 = inlined_call_operand.hbm [shape: f32[16,768], index: 0, kind: input, shape index: {}]   ;;  %s477_s1 = inlined_call_operand.hbm [shape: f32[1,768], index: 1, kind: input, shape index: {}]   ;;  %s478_s2 = inlined_call_operand.hbm [shape: f32[1,768], index: 2, kind: input, shape index: {}]   ;;  %s479_s3 = inlined_call_operand.hbm [shape: f32[16,768], index: 3, kind: output, shape index: {}]  }
   0x1   :  { %9 = vsyncpa [#allocation6], 0  ;;  %s29_s14 = sshll.u32 %s477_s1, 4  ;;  %s30_s14 = int_to_ptr.hbm [resolvable:$true] %s29_s14 }
   0x2   :  { %10 = vsyncpa [#allocation4], 0  ;;  %s356_s15 = smov [#allocation5]   ;;  %s15_s19 = sshll.u32 %s476_s0, 4  ;;  %s16_s19 = int_to_ptr.hbm [resolvable:$true] %s15_s19 }
   0x3   :  { %s31_s16 = sshll.u32 %s356_s15, 4  ;;  %s357_s20 = smov [#allocation2]   ;;  %s32_s16 = int_to_ptr.vmem [resolvable:$true] %s31_s16 }
   0x4   :  { %34 = dma.hbm_to_vmem [thread:$0]  %s30_s14, 96, %s32_s16, [#allocation6]  }
   0x5   :  { %s17_s21 = sshll.u32 %s357_s20, 4  ;;  %s358_s22 = smov 768   ;;  %s18_s21 = int_to_ptr.vmem [resolvable:$true] %s17_s21 }
   0x6   :  { %s359_s23 = smov 48   ;;  %s40_s25 = sshll.u32 %s478_s2, 4  ;;  %s41_s25 = int_to_ptr.hbm [resolvable:$true] %s40_s25 }
   0x7   :  { %23 = dma.hbm_to_vmem [thread:$0]  %s16_s19, 1536, %s18_s21, [#allocation3], %s358_s22, %s358_s22, %s359_s23  }
   0x8   :  { %s360_s26 = smov [#allocation7]  }
   0x9   :  { %s42_s27 = sshll.u32 %s360_s26, 4  ;;  %s43_s27 = int_to_ptr.vmem [resolvable:$true] %s42_s27 }
   0xa   :  { %45 = dma.hbm_to_vmem [thread:$0]  %s41_s25, 96, %s43_s27, [#allocation6]  }
   0xb   :  { %350 = dma.done.wait [#allocation3], 1536  }
   0xc   :  { %351 = vsyncadd [#allocation3], 4294965760 }
   0xd   :  { %352 = dma.done.wait [#allocation6], 192  }
   0xe   :  { %353 = vsyncadd [#allocation6], 4294967104  ;;  %v60_v0 = vld [vmem:[#allocation2] sm:$0xff]  ;;  %v61_v1 = vld [vmem:[#allocation2 + $0x8] sm:$0xff]  ;;  %s361_s0 = smov [#allocation8]   ;;  %s230_s30 = sshll.u32 %s479_s3, 4  ;;  %s231_s30 = int_to_ptr.hbm [resolvable:$true] %s230_s30 }
   0xf   :  { %v62_v2 = vld [vmem:[#allocation2 + $0x10] sm:$0xff]  ;;  %v63_v3 = vld [vmem:[#allocation2 + $0x18] sm:$0xff]  ;;  %v72_v4 = vadd.f32 %v61_v1, %v60_v0  ;;  %v68_v7 = vld [vmem:[#allocation2 + $0x40] sm:$0xff]  ;;  %s228_s2 = sshll.u32 %s361_s0, 4  ;;  %s229_s2 = int_to_ptr.vmem [resolvable:$true] %s228_s2 }
  0x10   :  { %v66_v5 = vld [vmem:[#allocation2 + $0x30] sm:$0xff]  ;;  %v67_v6 = vld [vmem:[#allocation2 + $0x38] sm:$0xff]  ;;  %v64_v10 = vld [vmem:[#allocation2 + $0x20] sm:$0xff] }
  0x11   :  { %v73_v8 = vadd.f32 %v72_v4, %v62_v2  ;;  %v79_v9 = vadd.f32 %v67_v6, %v66_v5  ;;  %v69_v11 = vld [vmem:[#allocation2 + $0x48] sm:$0xff]  ;;  %v70_v17 = vld [vmem:[#allocation2 + $0x50] sm:$0xff]  ;;  %v71_v20 = vld [vmem:[#allocation2 + $0x58] sm:$0xff] }
  0x12   :  { %v65_v14 = vld [vmem:[#allocation2 + $0x28] sm:$0xff] }
  0x13   :  { %v74_v12 = vadd.f32 %v73_v8, %v63_v3  ;;  %v80_v13 = vadd.f32 %v79_v9, %v68_v7 }
  0x15   :  { %v75_v15 = vadd.f32 %v74_v12, %v64_v10  ;;  %v81_v16 = vadd.f32 %v80_v13, %v69_v11 }
  0x17   :  { %v76_v18 = vadd.f32 %v75_v15, %v65_v14  ;;  %v82_v19 = vadd.f32 %v81_v16, %v70_v17 }
  0x19   :  { %77 = vadd.xlane.f32.xlu0 %v76_v18  ;;  %v83_v21 = vadd.f32 %v82_v19, %v71_v20 }
  0x21   :  { %84 = vadd.xlane.f32.xlu0 %v83_v21 }
  0x8c   :  { %v78_v22 = vpop.xlane.xlu0 %77 }
  0x8d   :  { %v86_v23 = vmul.f32 0.0013020834, %v78_v22 }
  0x8f   :  { %v394_v24 = vsub.f32 %v60_v0, %v86_v23  ;;  %v396_v25 = vsub.f32 %v61_v1, %v86_v23  ;;  %v398_v26 = vsub.f32 %v62_v2, %v86_v23  ;;  %v400_v27 = vsub.f32 %v63_v3, %v86_v23 }
  0x90   :  { %v406_v30 = vsub.f32 %v64_v10, %v86_v23  ;;  %v410_v34 = vsub.f32 %v65_v14, %v86_v23 }
  0x91   :  { %v100_v28 = vmul.f32 %v394_v24, %v394_v24  ;;  %v101_v29 = vmul.f32 %v396_v25, %v396_v25  ;;  %v102_v31 = vmul.f32 %v398_v26, %v398_v26  ;;  %v103_v36 = vmul.f32 %v400_v27, %v400_v27 }
  0x92   :  { %v104_v38 = vmul.f32 %v406_v30, %v406_v30  ;;  %v105_v43 = vmul.f32 %v410_v34, %v410_v34 }
  0x93   :  { %v112_v32 = vadd.f32 %v101_v29, %v100_v28 }
  0x94   :  { %v85_v33 = vpop.xlane.xlu0 %84 }
  0x95   :  { %v87_v35 = vmul.f32 0.0013020834, %v85_v33  ;;  %v113_v37 = vadd.f32 %v112_v32, %v102_v31 }
  0x97   :  { %v114_v39 = vadd.f32 %v113_v37, %v103_v36  ;;  %v416_v40 = vsub.f32 %v66_v5, %v87_v35  ;;  %v418_v41 = vsub.f32 %v67_v6, %v87_v35  ;;  %v420_v42 = vsub.f32 %v68_v7, %v87_v35  ;;  %v442_v5 = vld [vmem:[#allocation5] sm:$0x3f]  ;;  %v444_v7 = vld [vmem:[#allocation7] sm:$0x3f] }
  0x98   :  { %v424_v45 = vsub.f32 %v69_v11, %v87_v35  ;;  %v430_v49 = vsub.f32 %v70_v17, %v87_v35  ;;  %v434_v52 = vsub.f32 %v71_v20, %v87_v35  ;;  %v163_v10 = vperm.slane %v442_v5, 0 }
  0x99   :  { %v115_v44 = vadd.f32 %v114_v39, %v104_v38  ;;  %v106_v46 = vmul.f32 %v416_v40, %v416_v40  ;;  %v107_v47 = vmul.f32 %v418_v41, %v418_v41  ;;  %v108_v50 = vmul.f32 %v420_v42, %v420_v42 }
  0x9a   :  { %v109_v53 = vmul.f32 %v424_v45, %v424_v45  ;;  %v110_v55 = vmul.f32 %v430_v49, %v430_v49  ;;  %v111_v57 = vmul.f32 %v434_v52, %v434_v52  ;;  %v164_v11 = vperm.slane %v442_v5, 1 }
  0x9b   :  { %v116_v48 = vadd.f32 %v115_v44, %v105_v43  ;;  %v119_v51 = vadd.f32 %v107_v47, %v106_v46  ;;  %v165_v12 = vperm.slane %v442_v5, 2  ;;  %v166_v13 = vperm.slane %v442_v5, 3 }
  0x9c   :  { %v167_v15 = vperm.slane %v442_v5, 4  ;;  %v168_v17 = vperm.slane %v442_v5, 5  ;;  %v188_v18 = vperm.slane %v444_v7, 0  ;;  %v189_v19 = vperm.slane %v444_v7, 1 }
  0x9d   :  { %117 = vadd.xlane.f32.xlu1 %v116_v48  ;;  %v120_v54 = vadd.f32 %v119_v51, %v108_v50  ;;  %v190_v20 = vperm.slane %v444_v7, 2  ;;  %v191_v22 = vperm.slane %v444_v7, 3  ;;  %v192_v23 = vperm.slane %v444_v7, 4 }
  0x9e   :  { %v193_v37 = vperm.slane %v444_v7, 5 }
  0x9f   :  { %v121_v56 = vadd.f32 %v120_v54, %v109_v53 }
  0xa1   :  { %v122_v58 = vadd.f32 %v121_v56, %v110_v55 }
  0xa3   :  { %v123_v59 = vadd.f32 %v122_v58, %v111_v57 }
  0xa5   :  { %124 = vadd.xlane.f32.xlu1 %v123_v59 }
 0x110   :  { %v118_v60 = vpop.xlane.xlu1 %117 }
 0x111   :  { %v126_v61 = vmul.f32 0.0013020834, %v118_v60 }
 0x113   :  { %v128_v62 = vadd.f32 1e-05, %v126_v61 }
 0x115   :  { %250 = vrsqrt.f32 %v128_v62  ;;  %vm136_vm1 = vweird.f32 %v128_v62 }
 0x118   :  { %v125_v63 = vpop.xlane.xlu1 %124 }
 0x119   :  { %v127_v0 = vmul.f32 0.0013020834, %v125_v63 }
 0x11b   :  { %v251_v1 = vpop.eup %250  ;;  %v129_v2 = vadd.f32 1e-05, %v127_v0 }
 0x11c   :  { %v131_v3 = vmul.f32 %v251_v1, %v128_v62  ;;  %vm137_vm0 = vweird.f32 %v251_v1 }
 0x11d   :  { %252 = vrsqrt.f32 %v129_v2  ;;  %vm138_vm2 = vmor %vm136_vm1, %vm137_vm0  ;;  %vm146_vm4 = vweird.f32 %v129_v2 }
 0x11e   :  { %v132_v4 = vmul.f32 %v251_v1, %v131_v3 }
 0x120   :  { %v133_v6 = vmul.f32 0.5, %v132_v4 }
 0x122   :  { %v134_v8 = vsub.f32 1.5, %v133_v6 }
 0x123   :  { %v253_v9 = vpop.eup %252 }
 0x124   :  { %v135_v14 = vmul.f32 %v251_v1, %v134_v8  ;;  %v141_v16 = vmul.f32 %v253_v9, %v129_v2  ;;  %vm147_vm3 = vweird.f32 %v253_v9 }
 0x125   :  { %vm148_vm5 = vmor %vm146_vm4, %vm147_vm3 }
 0x126   :  { %v139_v21 = vsel %vm138_vm2, %v251_v1, %v135_v14  ;;  %v142_v28 = vmul.f32 %v253_v9, %v141_v16 }
 0x127   :  { %v150_v29 = vmul.f32 %v139_v21, %v394_v24  ;;  %v151_v31 = vmul.f32 %v139_v21, %v396_v25  ;;  %v152_v32 = vmul.f32 %v139_v21, %v398_v26  ;;  %v153_v33 = vmul.f32 %v139_v21, %v400_v27 }
 0x128   :  { %v154_v35 = vmul.f32 %v139_v21, %v406_v30  ;;  %v155_v36 = vmul.f32 %v139_v21, %v410_v34  ;;  %v143_v38 = vmul.f32 0.5, %v142_v28 }
 0x129   :  { %v175_v39 = vmul.f32 %v163_v10, %v150_v29  ;;  %v176_v43 = vmul.f32 %v164_v11, %v151_v31  ;;  %v177_v44 = vmul.f32 %v165_v12, %v152_v32  ;;  %v178_v46 = vmul.f32 %v166_v13, %v153_v33 }
 0x12a   :  { %v179_v47 = vmul.f32 %v167_v15, %v154_v35  ;;  %v180_v48 = vmul.f32 %v168_v17, %v155_v36  ;;  %v144_v24 = vsub.f32 1.5, %v143_v38 }
 0x12b   :  { %v200_v25 = vadd.f32 %v188_v18, %v175_v39  ;;  %v201_v50 = vadd.f32 %v189_v19, %v176_v43  ;;  %v202_v26 = vadd.f32 %v190_v20, %v177_v44  ;;  %v203_v51 = vadd.f32 %v191_v22, %v178_v46 }
 0x12c   :  { %v145_v27 = vmul.f32 %v253_v9, %v144_v24  ;;  %v204_v30 = vadd.f32 %v192_v23, %v179_v47  ;;  %v205_v34 = vadd.f32 %v193_v37, %v180_v48 }
 0x12d   :  { %212 = vst [vmem:[#allocation8] sm:$0xff] %v200_v25 }
 0x12e   :  { %213 = vst [vmem:[#allocation8 + $0x8] sm:$0xff] %v201_v50  ;;  %v149_v53 = vsel %vm148_vm5, %v253_v9, %v145_v27 }
 0x12f   :  { %214 = vst [vmem:[#allocation8 + $0x10] sm:$0xff] %v202_v26  ;;  %v156_v54 = vmul.f32 %v149_v53, %v416_v40  ;;  %v157_v55 = vmul.f32 %v149_v53, %v418_v41  ;;  %v158_v56 = vmul.f32 %v149_v53, %v420_v42  ;;  %v159_v57 = vmul.f32 %v149_v53, %v424_v45 }
 0x130   :  { %215 = vst [vmem:[#allocation8 + $0x18] sm:$0xff] %v203_v51  ;;  %v160_v58 = vmul.f32 %v149_v53, %v430_v49  ;;  %v161_v59 = vmul.f32 %v149_v53, %v434_v52 }
 0x131   :  { %216 = vst [vmem:[#allocation8 + $0x20] sm:$0xff] %v204_v30  ;;  %v181_v60 = vmul.f32 %v163_v10, %v156_v54  ;;  %v182_v61 = vmul.f32 %v164_v11, %v157_v55  ;;  %v183_v62 = vmul.f32 %v165_v12, %v158_v56  ;;  %v184_v63 = vmul.f32 %v166_v13, %v159_v57 }
 0x132   :  { %217 = vst [vmem:[#allocation8 + $0x28] sm:$0xff] %v205_v34  ;;  %v185_v0 = vmul.f32 %v167_v15, %v160_v58  ;;  %v186_v1 = vmul.f32 %v168_v17, %v161_v59 }
 0x133   :  { %v206_v40 = vadd.f32 %v188_v18, %v181_v60  ;;  %v207_v2 = vadd.f32 %v189_v19, %v182_v61  ;;  %v208_v41 = vadd.f32 %v190_v20, %v183_v62  ;;  %v209_v3 = vadd.f32 %v191_v22, %v184_v63 }
 0x134   :  { %v210_v42 = vadd.f32 %v192_v23, %v185_v0  ;;  %v211_v45 = vadd.f32 %v193_v37, %v186_v1 }
 0x135   :  { %218 = vst [vmem:[#allocation8 + $0x30] sm:$0xff] %v206_v40 }
 0x136   :  { %219 = vst [vmem:[#allocation8 + $0x38] sm:$0xff] %v207_v2 }
 0x137   :  { %220 = vst [vmem:[#allocation8 + $0x40] sm:$0xff] %v208_v41 }
 0x138   :  { %221 = vst [vmem:[#allocation8 + $0x48] sm:$0xff] %v209_v3 }
 0x139   :  { %222 = vst [vmem:[#allocation8 + $0x50] sm:$0xff] %v210_v42 }
 0x13a   :  { %223 = vst [vmem:[#allocation8 + $0x58] sm:$0xff] %v211_v45 }
 0x13b   :  { %236 = dma.vmem_to_hbm [thread:$0]  %s229_s2, 1536, %s231_s30, [#allocation4], %s358_s22, %s358_s22, %s359_s23  }
 0x13c   :  { %354 = dma.done.wait [#allocation4], 1536  }
 0x13d   :  { %355 = vsyncadd [#allocation4], 4294965760 }
 0x13e   :  { %241 = vsyncpa [#allocation3], 1 }
 0x13f   :  { %242 = vsyncpa [#allocation6], 1 }
 0x140   :  { %243 = vsyncpa [#allocation4], 1 }

</bundles_post_ra>
